<compile_context>
chip_gen: v7x
topology: tpu7x:2x2x1
jax: 0.10.0
libtpu: 0.0.40
codegen_flags: <defaults>
</compile_context>

<pallas_src>
import jax
import jax.numpy as jnp
from jax.experimental import pallas as pl
from jax.experimental.pallas import tpu as pltpu

# ----------------------------- hyper-params (small) -------------------------
VOCAB = 50
NUM_CLASS = 4
EMBED_DIM = 32          # embed_dim   (default 100 in the module; small here)
HIDDEN_N = 32           # hidden_n    (default 128 in the module; small here)
FILTER_KERNERS = (3, 4, 5)
BATCH = 2
SEQ_LEN = 16
C_PAD = 128             # lane-dense padded logits width


# ------------------------------- Pallas kernel ------------------------------
def textcnn_kernel(tok_ref, emb_ref,
                   w3_ref, w4_ref, w5_ref,
                   b3_ref, b4_ref, b5_ref,
                   fcw_ref, fcb_ref, out_ref):
    """Whole forward (embedding included) for all batch rows in one call.

    tok_ref : (B*L, 1)     i32   token ids
    emb_ref : (VOCAB, D)   f32   embedding table
    wK_ref  : (K*D, H)     f32   conv weights for kernel size K (im2row layout)
    bK_ref  : (1, H)       f32   conv biases
    fcw_ref : (3H, C_PAD)  f32   final Linear weight, zero-padded to 128 lanes
    fcb_ref : (1, C_PAD)   f32   final Linear bias, zero-padded
    out_ref : (B, C_PAD)   f32   padded logits
    """
    BL = tok_ref.shape[0]
    V, D = emb_ref.shape
    H = b3_ref.shape[-1]
    B = out_ref.shape[0]
    L = BL // B

    # ---- fused embedding gather: one-hot(tokens) @ emb_table on the MXU ----
    tok = tok_ref[...]                                          # (B*L, 1) i32
    onehot = (tok == jax.lax.broadcasted_iota(jnp.int32, (BL, V), 1)
              ).astype(jnp.float32)                             # (B*L, V)
    x2d = jnp.dot(onehot, emb_ref[...],
                  preferred_element_type=jnp.float32)           # (B*L, D)
    x = x2d.reshape(B, L, D)

    # ---- three conv branches, each as ONE im2row matmul ----
    feats = []
    for w_ref, b_ref, k in ((w3_ref, b3_ref, 3),
                            (w4_ref, b4_ref, 4),
                            (w5_ref, b5_ref, 5)):
        l_out = L - k + 1
        # im2row: windows[b, t, j*D + d] = x[b, t + j, d]
        win = jnp.concatenate([x[:, j:j + l_out, :] for j in range(k)],
                              axis=-1)                          # (B, l_out, k*D)
        win2d = win.reshape(B * l_out, k * D)                   # fold B into M
        y = jnp.dot(win2d, w_ref[...],
                    preferred_element_type=jnp.float32)         # (B*l_out, H)
        y = jnp.maximum(y + b_ref[...], 0.0)                    # bias + ReLU
        feats.append(jnp.max(y.reshape(B, l_out, H), axis=1))   # (B, H)

    # ---- tanh(concat) and a single (B, 3H) @ (3H, C_PAD) matmul ----
    feat = jnp.tanh(jnp.concatenate(feats, axis=-1))            # (B, 3H)
    out_ref[...] = (jnp.dot(feat, fcw_ref[...],
                            preferred_element_type=jnp.float32)
                    + fcb_ref[...])


def text_cnn_v2_forward(tokens, params):
    """Single pallas_call: embedding gather + convs + pool + tanh + FC."""
    emb, (w3, b3), (w4, b4), (w5, b5), fcw, fcb = params
    B, L = tokens.shape
    D = emb.shape[-1]
    H = b3.shape[-1]
    C = fcw.shape[-1]
    feat_dim = fcw.shape[0]

    # Lane-dense (128-wide) logits: pad FC params once; slice after the call.
    fcw_pad = jnp.zeros((feat_dim, C_PAD), jnp.float32).at[:, :C].set(fcw)
    fcb_pad = jnp.zeros((1, C_PAD), jnp.float32).at[:, :C].set(fcb)

    # Pre-reshape conv weights into im2row layout (k*D, H) -> no in-kernel
    # weight relayout.
    w3r = w3.reshape(3 * D, H)
    w4r = w4.reshape(4 * D, H)
    w5r = w5.reshape(5 * D, H)

    tok2d = tokens.reshape(B * L, 1).astype(jnp.int32)

    vmem = pl.BlockSpec(memory_space=pltpu.MemorySpace.VMEM)
    out_pad = pl.pallas_call(
        textcnn_kernel,
        out_shape=jax.ShapeDtypeStruct((B, C_PAD), jnp.float32),
        in_specs=[vmem] * 10,
        out_specs=vmem,
    )(tok2d, emb, w3r, w4r, w5r, b3, b4, b5, fcw_pad, fcb_pad)
    return out_pad[:, :C]


# --------------------------- deterministic params ---------------------------
def init_params(key):
    ks = jax.random.split(key, 8)
    # embedding: normal(0, 0.1)
    emb = 0.1 * jax.random.normal(ks[0], (VOCAB, EMBED_DIM), jnp.float32)

    convs = []
    for i, k in enumerate(FILTER_KERNERS):
        # kaiming_normal_(mode='fan_out') for Conv2d(1, H, (k, D)):
        # fan_out = H * k * D  -> std = sqrt(2 / fan_out)
        std = (2.0 / (HIDDEN_N * k * EMBED_DIM)) ** 0.5
        w = std * jax.random.normal(ks[1 + i], (k, EMBED_DIM, HIDDEN_N),
                                    jnp.float32)
        b = jnp.zeros((1, HIDDEN_N), jnp.float32)
        convs.append((w, b))

    feat_dim = HIDDEN_N * len(FILTER_KERNERS)
    # kaiming_normal_(mode='fan_out') for Linear(feat_dim, C): fan_out = C
    std = (2.0 / NUM_CLASS) ** 0.5
    fcw = std * jax.random.normal(ks[4], (feat_dim, NUM_CLASS), jnp.float32)
    fcb = jnp.zeros((1, NUM_CLASS), jnp.float32)

    return (emb, convs[0], convs[1], convs[2], fcw, fcb)


# ------------------------------ reference (JAX) ------------------------------
def reference_forward(tokens, params):
    emb_table, (w3, b3), (w4, b4), (w5, b5), fcw, fcb = params
    x = jnp.take(emb_table, tokens, axis=0).astype(jnp.float32)      # (B, L, D)
    feats = []
    for (w, b) in ((w3, b3), (w4, b4), (w5, b5)):
        k = w.shape[0]
        l_out = x.shape[1] - k + 1
        acc = jnp.zeros((x.shape[0], l_out, w.shape[-1]), jnp.float32)
        for j in range(k):
            acc = acc + jnp.einsum("bld,dh->blh", x[:, j:j + l_out, :], w[j])
        acc = jnp.maximum(acc + b[None, :, :], 0.0)
        feats.append(jnp.max(acc, axis=1))
    feat = jnp.tanh(jnp.concatenate(feats, axis=-1))
    return feat @ fcw + fcb


# ----------------------------------- main ------------------------------------
if __name__ == "__main__":
    key = jax.random.PRNGKey(0)
    k_tok, k_par = jax.random.split(key)

    tokens = jax.random.randint(k_tok, (BATCH, SEQ_LEN), 0, VOCAB,
                                dtype=jnp.int32)
    params = init_params(k_par)

    out = text_cnn_v2_forward(tokens, params)
    out = jax.block_until_ready(out)

    ref = reference_forward(tokens, params)
    assert out.shape == (BATCH, NUM_CLASS)
    assert jnp.allclose(out, ref, atol=1e-4, rtol=1e-4)

    print("KERNEL_OK")
</pallas_src>

<mosaic_0001>
module attributes {stable_mosaic.version = 11 : i64} {
  func.func @textcnn_kernel(%arg0: memref<32x1xi32, #tpu.memory_space<vmem>>, %arg1: memref<50x32xf32, #tpu.memory_space<vmem>>, %arg2: memref<96x32xf32, #tpu.memory_space<vmem>>, %arg3: memref<128x32xf32, #tpu.memory_space<vmem>>, %arg4: memref<160x32xf32, #tpu.memory_space<vmem>>, %arg5: memref<1x32xf32, #tpu.memory_space<vmem>>, %arg6: memref<1x32xf32, #tpu.memory_space<vmem>>, %arg7: memref<1x32xf32, #tpu.memory_space<vmem>>, %arg8: memref<96x128xf32, #tpu.memory_space<vmem>>, %arg9: memref<1x128xf32, #tpu.memory_space<vmem>>, %arg10: memref<2x128xf32, #tpu.memory_space<vmem>>) attributes {dimension_semantics = [], scalar_prefetch = 0 : i64, scratch_operands = 0 : i64, tpu.core_type = #tpu.core_type<tc>} {
    %c0 = arith.constant 0 : index
    %c0_0 = arith.constant 0 : index
    %0 = vector.load %arg0[%c0, %c0_0] : memref<32x1xi32, #tpu.memory_space<vmem>>, vector<32x1xi32>
    %1 = tpu.iota {dimensions = array<i32: 1>} : vector<32x50xi32>
    %2 = vector.broadcast %0 : vector<32x1xi32> to vector<32x50xi32>
    %3 = arith.cmpi eq, %2, %1 : vector<32x50xi32>
    %4 = arith.extui %3 : vector<32x50xi1> to vector<32x50xi32>
    %5 = arith.sitofp %4 : vector<32x50xi32> to vector<32x50xf32>
    %c0_1 = arith.constant 0 : index
    %c0_2 = arith.constant 0 : index
    %6 = vector.load %arg1[%c0_1, %c0_2] : memref<50x32xf32, #tpu.memory_space<vmem>>, vector<50x32xf32>
    %cst = arith.constant dense<0.000000e+00> : vector<32x32xf32>
    %7 = tpu.matmul %5, %6, %cst {dimension_numbers = #tpu.dot_dimension_numbers<[1], [0], [0], [1], [0, 0, 1, 1], [], []>} : vector<32x50xf32>, vector<50x32xf32>, vector<32x32xf32> -> vector<32x32xf32>
    %8 = vector.shape_cast %7 : vector<32x32xf32> to vector<2x16x32xf32>
    %9 = vector.extract_strided_slice %8 {offsets = [0, 0, 0], sizes = [2, 14, 32], strides = [1, 1, 1]} : vector<2x16x32xf32> to vector<2x14x32xf32>
    %10 = vector.extract_strided_slice %8 {offsets = [0, 1, 0], sizes = [2, 14, 32], strides = [1, 1, 1]} : vector<2x16x32xf32> to vector<2x14x32xf32>
    %11 = vector.extract_strided_slice %8 {offsets = [0, 2, 0], sizes = [2, 14, 32], strides = [1, 1, 1]} : vector<2x16x32xf32> to vector<2x14x32xf32>
    %12 = tpu.concatenate %9, %10, %11 in 2 : vector<2x14x32xf32>, vector<2x14x32xf32>, vector<2x14x32xf32> -> vector<2x14x96xf32>
    %13 = vector.shape_cast %12 : vector<2x14x96xf32> to vector<28x96xf32>
    %c0_3 = arith.constant 0 : index
    %c0_4 = arith.constant 0 : index
    %14 = vector.load %arg2[%c0_3, %c0_4] : memref<96x32xf32, #tpu.memory_space<vmem>>, vector<96x32xf32>
    %cst_5 = arith.constant dense<0.000000e+00> : vector<28x32xf32>
    %15 = tpu.matmul %13, %14, %cst_5 {dimension_numbers = #tpu.dot_dimension_numbers<[1], [0], [0], [1], [0, 0, 1, 1], [], []>} : vector<28x96xf32>, vector<96x32xf32>, vector<28x32xf32> -> vector<28x32xf32>
    %c0_6 = arith.constant 0 : index
    %c0_7 = arith.constant 0 : index
    %16 = vector.load %arg5[%c0_6, %c0_7] : memref<1x32xf32, #tpu.memory_space<vmem>>, vector<1x32xf32>
    %17 = vector.broadcast %16 : vector<1x32xf32> to vector<28x32xf32>
    %18 = arith.addf %15, %17 : vector<28x32xf32>
    %cst_8 = arith.constant 0.000000e+00 : f32
    %19 = vector.broadcast %cst_8 : f32 to vector<28x32xf32>
    %20 = arith.maximumf %18, %19 : vector<28x32xf32>
    %21 = vector.shape_cast %20 : vector<28x32xf32> to vector<2x14x32xf32>
    %cst_9 = arith.constant dense<0xFF800000> : vector<2x32xf32>
    %22 = vector.multi_reduction <maximumf>, %21, %cst_9 [1] : vector<2x14x32xf32> to vector<2x32xf32>
    %23 = vector.extract_strided_slice %8 {offsets = [0, 0, 0], sizes = [2, 13, 32], strides = [1, 1, 1]} : vector<2x16x32xf32> to vector<2x13x32xf32>
    %24 = vector.extract_strided_slice %8 {offsets = [0, 1, 0], sizes = [2, 13, 32], strides = [1, 1, 1]} : vector<2x16x32xf32> to vector<2x13x32xf32>
    %25 = vector.extract_strided_slice %8 {offsets = [0, 2, 0], sizes = [2, 13, 32], strides = [1, 1, 1]} : vector<2x16x32xf32> to vector<2x13x32xf32>
    %26 = vector.extract_strided_slice %8 {offsets = [0, 3, 0], sizes = [2, 13, 32], strides = [1, 1, 1]} : vector<2x16x32xf32> to vector<2x13x32xf32>
    %27 = tpu.concatenate %23, %24, %25, %26 in 2 : vector<2x13x32xf32>, vector<2x13x32xf32>, vector<2x13x32xf32>, vector<2x13x32xf32> -> vector<2x13x128xf32>
    %28 = vector.shape_cast %27 : vector<2x13x128xf32> to vector<26x128xf32>
    %c0_10 = arith.constant 0 : index
    %c0_11 = arith.constant 0 : index
    %29 = vector.load %arg3[%c0_10, %c0_11] : memref<128x32xf32, #tpu.memory_space<vmem>>, vector<128x32xf32>
    %cst_12 = arith.constant dense<0.000000e+00> : vector<26x32xf32>
    %30 = tpu.matmul %28, %29, %cst_12 {dimension_numbers = #tpu.dot_dimension_numbers<[1], [0], [0], [1], [0, 0, 1, 1], [], []>} : vector<26x128xf32>, vector<128x32xf32>, vector<26x32xf32> -> vector<26x32xf32>
    %c0_13 = arith.constant 0 : index
    %c0_14 = arith.constant 0 : index
    %31 = vector.load %arg6[%c0_13, %c0_14] : memref<1x32xf32, #tpu.memory_space<vmem>>, vector<1x32xf32>
    %32 = vector.broadcast %31 : vector<1x32xf32> to vector<26x32xf32>
    %33 = arith.addf %30, %32 : vector<26x32xf32>
    %cst_15 = arith.constant 0.000000e+00 : f32
    %34 = vector.broadcast %cst_15 : f32 to vector<26x32xf32>
    %35 = arith.maximumf %33, %34 : vector<26x32xf32>
    %36 = vector.shape_cast %35 : vector<26x32xf32> to vector<2x13x32xf32>
    %cst_16 = arith.constant dense<0xFF800000> : vector<2x32xf32>
    %37 = vector.multi_reduction <maximumf>, %36, %cst_16 [1] : vector<2x13x32xf32> to vector<2x32xf32>
    %38 = vector.extract_strided_slice %8 {offsets = [0, 0, 0], sizes = [2, 12, 32], strides = [1, 1, 1]} : vector<2x16x32xf32> to vector<2x12x32xf32>
    %39 = vector.extract_strided_slice %8 {offsets = [0, 1, 0], sizes = [2, 12, 32], strides = [1, 1, 1]} : vector<2x16x32xf32> to vector<2x12x32xf32>
    %40 = vector.extract_strided_slice %8 {offsets = [0, 2, 0], sizes = [2, 12, 32], strides = [1, 1, 1]} : vector<2x16x32xf32> to vector<2x12x32xf32>
    %41 = vector.extract_strided_slice %8 {offsets = [0, 3, 0], sizes = [2, 12, 32], strides = [1, 1, 1]} : vector<2x16x32xf32> to vector<2x12x32xf32>
    %42 = vector.extract_strided_slice %8 {offsets = [0, 4, 0], sizes = [2, 12, 32], strides = [1, 1, 1]} : vector<2x16x32xf32> to vector<2x12x32xf32>
    %43 = tpu.concatenate %38, %39, %40, %41, %42 in 2 : vector<2x12x32xf32>, vector<2x12x32xf32>, vector<2x12x32xf32>, vector<2x12x32xf32>, vector<2x12x32xf32> -> vector<2x12x160xf32>
    %44 = vector.shape_cast %43 : vector<2x12x160xf32> to vector<24x160xf32>
    %c0_17 = arith.constant 0 : index
    %c0_18 = arith.constant 0 : index
    %45 = vector.load %arg4[%c0_17, %c0_18] : memref<160x32xf32, #tpu.memory_space<vmem>>, vector<160x32xf32>
    %cst_19 = arith.constant dense<0.000000e+00> : vector<24x32xf32>
    %46 = tpu.matmul %44, %45, %cst_19 {dimension_numbers = #tpu.dot_dimension_numbers<[1], [0], [0], [1], [0, 0, 1, 1], [], []>} : vector<24x160xf32>, vector<160x32xf32>, vector<24x32xf32> -> vector<24x32xf32>
    %c0_20 = arith.constant 0 : index
    %c0_21 = arith.constant 0 : index
    %47 = vector.load %arg7[%c0_20, %c0_21] : memref<1x32xf32, #tpu.memory_space<vmem>>, vector<1x32xf32>
    %48 = vector.broadcast %47 : vector<1x32xf32> to vector<24x32xf32>
    %49 = arith.addf %46, %48 : vector<24x32xf32>
    %cst_22 = arith.constant 0.000000e+00 : f32
    %50 = vector.broadcast %cst_22 : f32 to vector<24x32xf32>
    %51 = arith.maximumf %49, %50 : vector<24x32xf32>
    %52 = vector.shape_cast %51 : vector<24x32xf32> to vector<2x12x32xf32>
    %cst_23 = arith.constant dense<0xFF800000> : vector<2x32xf32>
    %53 = vector.multi_reduction <maximumf>, %52, %cst_23 [1] : vector<2x12x32xf32> to vector<2x32xf32>
    %54 = tpu.concatenate %22, %37, %53 in 1 : vector<2x32xf32>, vector<2x32xf32>, vector<2x32xf32> -> vector<2x96xf32>
    %55 = math.tanh %54 : vector<2x96xf32>
    %c0_24 = arith.constant 0 : index
    %c0_25 = arith.constant 0 : index
    %56 = vector.load %arg8[%c0_24, %c0_25] : memref<96x128xf32, #tpu.memory_space<vmem>>, vector<96x128xf32>
    %cst_26 = arith.constant dense<0.000000e+00> : vector<2x128xf32>
    %57 = tpu.matmul %55, %56, %cst_26 {dimension_numbers = #tpu.dot_dimension_numbers<[1], [0], [0], [1], [0, 0, 1, 1], [], []>} : vector<2x96xf32>, vector<96x128xf32>, vector<2x128xf32> -> vector<2x128xf32>
    %c0_27 = arith.constant 0 : index
    %c0_28 = arith.constant 0 : index
    %58 = vector.load %arg9[%c0_27, %c0_28] : memref<1x128xf32, #tpu.memory_space<vmem>>, vector<1x128xf32>
    %59 = vector.broadcast %58 : vector<1x128xf32> to vector<2x128xf32>
    %60 = arith.addf %57, %59 : vector<2x128xf32>
    %c0_29 = arith.constant 0 : index
    %c0_30 = arith.constant 0 : index
    %61 = vector.load %arg10[%c0_29, %c0_30] : memref<2x128xf32, #tpu.memory_space<vmem>>, vector<2x128xf32>
    tpu.vector_store %arg10[%c0_29, %c0_30], %60 {strides = array<i32>} : memref<2x128xf32, #tpu.memory_space<vmem>>, vector<2x128xf32>,
    return
  }
}

</mosaic_0001>

<bundles_post_ra>
// kernel: tpu_custom_call.1
= control target key start
LH: loop header
LB: loop body
LE: loop exit
PB: predicated region body
PF: predicated region fallthrough
CT: control target
= control target key end

     0   :  { %v2133_v2 = vmov 0   ;;  %s2788_s0 = inlined_call_operand.vmem [shape: s32[32,1], index: 0, kind: input, shape index: {}]   ;;  %s2789_s1 = inlined_call_operand.vmem [shape: f32[50,32], index: 1, kind: input, shape index: {}]   ;;  %s2790_s2 = inlined_call_operand.vmem [shape: f32[96,32], index: 2, kind: input, shape index: {}]   ;;  %s2791_s3 = inlined_call_operand.vmem [shape: f32[128,32], index: 3, kind: input, shape index: {}]   ;;  %s2792_s4 = inlined_call_operand.vmem [shape: f32[160,32], index: 4, kind: input, shape index: {}]   ;;  %s2793_s5 = inlined_call_operand.vmem [shape: f32[1,32], index: 5, kind: input, shape index: {}]   ;;  %s2794_s6 = inlined_call_operand.vmem [shape: f32[1,32], index: 6, kind: input, shape index: {}]   ;;  %s2795_s7 = inlined_call_operand.vmem [shape: f32[1,32], index: 7, kind: input, shape index: {}]   ;;  %s2796_s8 = inlined_call_operand.vmem [shape: f32[96,128], index: 8, kind: input, shape index: {}]   ;;  %s2797_s9 = inlined_call_operand.vmem [shape: f32[1,128], index: 9, kind: input, shape index: {}]   ;;  %s2798_s10 = inlined_call_operand.hbm [shape: f32[2,128], index: 10, kind: output, shape index: {}]  }
   0x1   :  { %v36_v0 = vld [vmem:[%s2788_s0] sm:$0xff]  ;;  %v38_v1 = vld [vmem:[%s2788_s0 + $0x10] sm:$0xff]  ;;  %2105 = vset.pattern.permute.xlu0 %v2133_v2  ;;  %2106 = vset.pattern.permute.xlu1 %v2133_v2  ;;  %v37_v3 = vld [vmem:[%s2788_s0 + $0x8] sm:$0xff] }
   0x2   :  { %v66_v4 = vld [vmem:[%s2789_s1] sm:$0xff]  ;;  %v67_v5 = vld [vmem:[%s2789_s1 + $0x8] sm:$0xff]  ;;  %43 = vperm.xlu0 %2105, %v36_v0   ;;  %49 = vperm.xlu1 %2106, %v38_v1   ;;  %v39_v6 = vld [vmem:[%s2788_s0 + $0x18] sm:$0xff] }
   0x3   :  { %v1979_v7 = vpack.c.bf16 %v67_v5, %v66_v4  ;;  %v68_v8 = vld [vmem:[%s2789_s1 + $0x10] sm:$0xff]  ;;  %v69_v9 = vld [vmem:[%s2789_s1 + $0x18] sm:$0xff]  ;;  %v70_v11 = vld [vmem:[%s2789_s1 + $0x20] sm:$0xff] }
   0x4   :  { %v1983_v10 = vpack.c.bf16 %v69_v9, %v68_v8  ;;  %v71_v12 = vld [vmem:[%s2789_s1 + $0x28] sm:$0xff] }
   0x5   :  { %15 = vsyncpa [#allocation3], 0  ;;  %1980 = vmatprep.subr.bf16.mxu0 %v1979_v7  ;;  %v1987_v13 = vpack.c.bf16 %v71_v12, %v70_v11  ;;  %v72_v14 = vld [vmem:[%s2789_s1 + $0x30] sm:$0x3]  ;;  %vm86_vm0 = vcmask 1041408   ;;  %v40_v15 = vlaneseq  ;;  %vm73_vm1 = vcmask 408576  }
   0x6   :  { %1982 = vmatpush3.bf16.msra.mxu0 %v1979_v7  ;;  %46 = vperm.xlu0 %2105, %v37_v3   ;;  %v2134_v19 = vmov 0.0   ;;  %v297_v26 = vld [vmem:[%s2790_s2] sm:$0xff]  ;;  %v298_v27 = vld [vmem:[%s2790_s2 + $0x8] sm:$0xff]  ;;  %v299_v28 = vld [vmem:[%s2790_s2 + $0x10] sm:$0xff]  ;;  %vm198_vm6 = vcmask 1045504   ;;  %vm179_vm7 = vcmask 1046528  }
   0x7   :  { %52 = vperm.xlu1 %2106, %v39_v6   ;;  %1984 = vmatprep.subr.bf16.mxu0 %v1983_v10  ;;  %v41_v16 = vand.u32 127, %v40_v15  ;;  %v1991_v29 = vpack.c.bf16 %v298_v27, %v297_v26  ;;  %v300_v30 = vld [vmem:[%s2790_s2 + $0x18] sm:$0xff]  ;;  %v301_v32 = vld [vmem:[%s2790_s2 + $0x20] sm:$0xff]  ;;  %v302_v33 = vld [vmem:[%s2790_s2 + $0x28] sm:$0xff]  ;;  %vm625_vm8 = vcmask 1044480   ;;  %vm1478_vm9 = vcmask 1043456  }
   0x8   :  { %v1995_v31 = vpack.c.bf16 %v300_v30, %v299_v28  ;;  %v828_v34 = vld [vmem:[%s2791_s3] sm:$0xff]  ;;  %v1999_v35 = vpack.c.bf16 %v302_v33, %v301_v32  ;;  %v829_v36 = vld [vmem:[%s2791_s3 + $0x8] sm:$0xff]  ;;  %v303_v38 = vld [vmem:[%s2790_s2 + $0x30] sm:$0xff]  ;;  %s2136_s11 = smov 32   ;;  %v2137_v26 = vmov 0.0|0.0   ;;  %s2138_s14 = smov 96  }
   0x9   :  { %1992 = vmatprep.subr.bf16.mxu1 %v1991_v29  ;;  %v2015_v37 = vpack.c.bf16 %v829_v36, %v828_v34  ;;  %v304_v39 = vld [vmem:[%s2790_s2 + $0x38] sm:$0xff]  ;;  %v830_v40 = vld [vmem:[%s2791_s3 + $0x10] sm:$0xff]  ;;  %v305_v44 = vld [vmem:[%s2790_s2 + $0x40] sm:$0xff]  ;;  %v2139_v36 = vmov 1983009808   ;;  %vm217_vm10 = vcmask 261120  }
   0xa   :  { %1986 = vmatpush3.bf16.msra.mxu0 %v1983_v10  ;;  %1994 = vmatpush3.bf16.msra.mxu1 %v1991_v29  ;;  %v2003_v41 = vpack.c.bf16 %v304_v39, %v303_v38  ;;  %v831_v42 = vld [vmem:[%s2791_s3 + $0x18] sm:$0xff]  ;;  %v306_v45 = vld [vmem:[%s2790_s2 + $0x48] sm:$0xff]  ;;  %v832_v46 = vld [vmem:[%s2791_s3 + $0x20] sm:$0xff]  ;;  %v236_v39 = vshrl.u32 %v40_v15, 7  ;;  %vm222_vm11 = vcmask 523264   ;;  %vm375_vm12 = vcmask 785408  }
   0xb   :  { %1988 = vmatprep.subr.bf16.mxu0 %v1987_v13  ;;  %1996 = vmatprep.subr.bf16.mxu1 %v1995_v31  ;;  %v2019_v43 = vpack.c.bf16 %v831_v42, %v830_v40  ;;  %v2007_v47 = vpack.c.bf16 %v306_v45, %v305_v44  ;;  %v833_v48 = vld [vmem:[%s2791_s3 + $0x28] sm:$0xff]  ;;  %v307_v58 = vld [vmem:[%s2790_s2 + $0x50] sm:$0xff]  ;;  %v308_v59 = vld [vmem:[%s2790_s2 + $0x58] sm:$0xff]  ;;  %s2135_s2 = smov 64   ;;  %v2140_v44 = vmov 1966171168  }
   0xc   :  { %v2023_v50 = vpack.c.bf16 %v833_v48, %v832_v46  ;;  %v834_v60 = vld [vmem:[%s2791_s3 + $0x30] sm:$0xff]  ;;  %v2011_v61 = vpack.c.bf16 %v308_v59, %v307_v58  ;;  %v835_v62 = vld [vmem:[%s2791_s3 + $0x38] sm:$0xff]  ;;  %v840_v30 = vld [vmem:[%s2791_s3 + $0x60] sm:$0xff]  ;;  %v654_v45 = vunpack.c.l.s4 %v2140_v44  ;;  %vm607_vm13 = vcmask 259072  }
   0xd   :  { %v2027_v5 = vpack.c.bf16 %v835_v62, %v834_v60  ;;  %v838_v27 = vld [vmem:[%s2791_s3 + $0x50] sm:$0xff]  ;;  %v839_v28 = vld [vmem:[%s2791_s3 + $0x58] sm:$0xff]  ;;  %v2390_v62 = vld [vmem:[%s2792_s4] sm:$0xff]  ;;  %vm1460_vm14 = vcmask 258048   ;;  %vm1628_vm15 = vcmask 257024  }
   0xe   :  { %1990 = vmatpush3.bf16.msra.mxu0 %v1987_v13  ;;  %1998 = vmatpush3.bf16.msra.mxu1 %v1995_v31  ;;  %v2035_v29 = vpack.c.bf16 %v839_v28, %v838_v27  ;;  %v841_v31 = vld [vmem:[%s2791_s3 + $0x68] sm:$0xff]  ;;  %v842_v33 = vld [vmem:[%s2791_s3 + $0x70] sm:$0xff]  ;;  %v843_v34 = vld [vmem:[%s2791_s3 + $0x78] sm:$0xff] }
   0xf   :  { %1876 = vmatprep.subr.msk.mxu0 %vm86_vm0, %v72_v14  ;;  %2000 = vmatprep.subr.bf16.mxu1 %v1999_v35  ;;  %v2039_v32 = vpack.c.bf16 %v841_v31, %v840_v30  ;;  %v2438_v27 = vld [vmem:[%s2792_s4 + $0x38] sm:$0xff]  ;;  %v2443_v28 = vld [vmem:[%s2792_s4 + $0x40] sm:$0xff] }
  0x12   :  { %1877 = vmatpush3.msk.msra.mxu0 %vm86_vm0, %v72_v14  ;;  %2002 = vmatpush3.bf16.msra.mxu1 %v1999_v35  ;;  %v2043_v35 = vpack.c.bf16 %v843_v34, %v842_v33  ;;  %vm1648_vm0 = vcmask 1041409  }
  0x13   :  { %2016 = vmatprep.subr.bf16.mxu0 %v2015_v37  ;;  %2004 = vmatprep.subr.bf16.mxu1 %v2003_v41 }
  0x16   :  { %2006 = vmatpush3.bf16.msra.mxu1 %v2003_v41 }
  0x17   :  { %2008 = vmatprep.subr.bf16.mxu1 %v2007_v47 }
  0x1a   :  { %2010 = vmatpush3.bf16.msra.mxu1 %v2007_v47 }
  0x1b   :  { %2012 = vmatprep.subr.bf16.mxu1 %v2011_v61 }
  0x1e   :  { %2014 = vmatpush3.bf16.msra.mxu1 %v2011_v61 }
  0x1f   :  { %2047 = vmatprep.subr.bf16.mxu1 %v2137_v26 }
  0x81   :  { %v44_v17 = vpop.permute.xlu0 %43  ;;  %v50_v18 = vpop.permute.xlu1 %49 }
  0x82   :  { %vm54_vm2 = vcmp.eq.s32.totalorder %v44_v17, %v41_v16  ;;  %vm56_vm3 = vcmp.eq.s32.totalorder %v50_v18, %v41_v16 }
  0x83   :  { %v1773_v20 = vsel %vm54_vm2, 1.0, %v2134_v19  ;;  %v1775_v23 = vsel %vm56_vm3, 1.0, %v2134_v19 }
  0x84   :  { %1878 = vmatprep.mubr.msk.f32.mxu0 %vm73_vm1, %v1773_v20 }
  0x85   :  { %v47_v21 = vpop.permute.xlu0 %46 }
  0x86   :  { %v53_v22 = vpop.permute.xlu1 %52  ;;  %vm55_vm4 = vcmp.eq.s32.totalorder %v47_v21, %v41_v16 }
  0x87   :  { %vm57_vm5 = vcmp.eq.s32.totalorder %v53_v22, %v41_v16  ;;  %v1774_v24 = vsel %vm55_vm4, 1.0, %v2134_v19  ;;  %v836_v22 = vld [vmem:[%s2791_s3 + $0x40] sm:$0xff] }
  0x88   :  { %1879 = vmatmul.mubr.msk.f32.vlgmr.msra.gmra.mrb[0].mxu0 %vm73_vm1, %v1774_v24  ;;  %v1776_v25 = vsel %vm57_vm5, 1.0, %v2134_v19 }
  0x89   :  { %1881 = vmatprep.mubr.msk.f32.mxu0 %vm73_vm1, %v1775_v23  ;;  %2018 = vmatpush3.bf16.msra.mxu0 %v2015_v37  ;;  %v837_v23 = vld [vmem:[%s2791_s3 + $0x48] sm:$0xff]  ;;  %v233_v37 = vunpack.c.l.s4 %v2139_v36 }
  0x8a   :  { %2020 = vmatprep.subr.bf16.mxu0 %v2019_v43 }
  0x8b   :  { %v234_v38 = vunpack.c.0.s8 %v233_v37 }
  0x8c   :  { %1882 = vmatmul.mubr.msk.f32.gmra.mrb[2].mxu0 %vm73_vm1, %v1776_v25  ;;  %v2031_v25 = vpack.c.bf16 %v837_v23, %v836_v22  ;;  %vm2141_vm1 = vmmov 0  }
  0x8d   :  { %2022 = vmatpush3.bf16.msra.mxu0 %v2019_v43  ;;  %v2376_v40 = vsub.s32 %v234_v38, %v236_v39 }
  0x8e   :  { %2024 = vmatprep.subr.bf16.mxu0 %v2023_v50 }
  0x91   :  { %2026 = vmatpush3.bf16.msra.mxu0 %v2023_v50 }
  0x92   :  { %2028 = vmatprep.subr.bf16.mxu0 %v2027_v5 }
  0x95   :  { %2030 = vmatpush3.bf16.msra.mxu0 %v2027_v5 }
  0x96   :  { %2032 = vmatprep.subr.bf16.mxu0 %v2031_v25 }
  0x99   :  { %2034 = vmatpush3.bf16.msra.mxu0 %v2031_v25 }
  0x9a   :  { %2036 = vmatprep.subr.bf16.mxu0 %v2035_v29 }
  0x9d   :  { %2038 = vmatpush3.bf16.msra.mxu0 %v2035_v29  ;;  %v2448_v29 = vld [vmem:[%s2792_s4 + $0x48] sm:$0xff] }
  0x9e   :  { %2040 = vmatprep.subr.bf16.mxu0 %v2039_v32 }
  0xa1   :  { %2042 = vmatpush3.bf16.msra.mxu0 %v2039_v32 }
  0xa2   :  { %2044 = vmatprep.subr.bf16.mxu0 %v2043_v35 }
  0xa5   :  { %2046 = vmatpush3.bf16.msra.mxu0 %v2043_v35 }
  0xa6   :  { %2077 = vmatprep.subr.bf16.mxu0 %v2137_v26 }
 0x15b   :  { %v2288_v49 = vpop.f32.mrb[0].mxu0 }
 0x15c   :  { %v2290_v51 = vpop.f32.mrb[1].mxu0  ;;  %v200_v52 = vrot.slane %v2288_v49, 2  ;;  %v181_v53 = vrot.slane %v2288_v49, 1  ;;  %v627_v54 = vrot.slane %v2288_v49, 3  ;;  %v1480_v0 = vrot.slane %v2288_v49, 4 }
 0x15d   :  { %v199_v55 = vrot.slane %v2290_v51, 2  ;;  %v180_v56 = vrot.slane %v2290_v51, 1  ;;  %v626_v57 = vrot.slane %v2290_v51, 3  ;;  %v1479_v63 = vrot.slane %v2290_v51, 4 }
 0x15f   :  { %v2312_v1 = vpop.f32.mrb[2].mxu0  ;;  %v201_v2 = vsel %vm198_vm6, %v199_v55, %v200_v52  ;;  %v182_v3 = vsel %vm179_vm7, %v180_v56, %v181_v53  ;;  %v628_v4 = vsel %vm625_vm8, %v626_v57, %v627_v54  ;;  %v2330_v16 = vsel %vm1478_vm9, %v1479_v63, %v1480_v0 }
 0x160   :  { %v1483_v6 = vrot.slane %v2312_v1, 4  ;;  %205 = vrot.lane.b32.xlu1 %v201_v2, %s2135_s2  ;;  %186 = vrot.lane.b32.xlu0 %v182_v3, %s2136_s11  ;;  %v2320_v7 = vpop.f32.mrb[3].mxu0  ;;  %v203_v8 = vrot.slane %v2312_v1, 2  ;;  %v184_v9 = vrot.slane %v2312_v1, 1  ;;  %v630_v10 = vrot.slane %v2312_v1, 3  ;;  %v2402_v2 = vld [vmem:[%s2792_s4 + $0x10] sm:$0xff] }
 0x161   :  { %v1482_v11 = vrot.slane %v2320_v7, 4  ;;  %v202_v12 = vrot.slane %v2320_v7, 2  ;;  %v183_v13 = vrot.slane %v2320_v7, 1  ;;  %v629_v14 = vrot.slane %v2320_v7, 3  ;;  %v2407_v3 = vld [vmem:[%s2792_s4 + $0x18] sm:$0xff] }
 0x162   :  { %v655_v55 = vunpack.c.0.s8 %v654_v45  ;;  %v2051_v25 = vpack.c.bf16 %v2407_v3, %v2402_v2 }
 0x163   :  { %v204_v17 = vsel %vm198_vm6, %v202_v12, %v203_v8  ;;  %v185_v18 = vsel %vm179_vm7, %v183_v13, %v184_v9  ;;  %v631_v20 = vsel %vm625_vm8, %v629_v14, %v630_v10  ;;  %v2338_v21 = vsel %vm1478_vm9, %v1482_v11, %v1483_v6  ;;  %v2428_v14 = vld [vmem:[%s2792_s4 + $0x30] sm:$0xff] }
 0x164   :  { %207 = vrot.lane.b32.xlu1 %v200_v52, %s2135_s2  ;;  %188 = vrot.lane.b32.xlu0 %v181_v53, %s2136_s11  ;;  %v2349_v24 = vcombine.low %v1480_v0, %v2338_v21  ;;  %v2397_v0 = vld [vmem:[%s2792_s4 + $0x8] sm:$0xff] }
 0x165   :  { %v2048_v23 = vpack.c.bf16 %v2397_v0, %v2390_v62 }
 0x168   :  { %209 = vrot.lane.b32.xlu1 %v204_v17, %s2135_s2  ;;  %190 = vrot.lane.b32.xlu0 %v185_v18, %s2136_s11 }
 0x16c   :  { %192 = vrot.lane.b32.xlu1 %v184_v9, %s2136_s11  ;;  %632 = vrot.lane.b32.xlu0 %v628_v4, %s2138_s14  ;;  %v2409_v4 = vsub.s32 %v655_v55, %v236_v39  ;;  %v2420_v9 = vld [vmem:[%s2792_s4 + $0x28] sm:$0xff] }
 0x170   :  { %636 = vrot.lane.b32.xlu1 %v631_v20, %s2138_s14  ;;  %634 = vrot.lane.b32.xlu0 %v627_v54, %s2138_s14 }
 0x174   :  { %638 = vrot.lane.b32.xlu1 %v630_v10, %s2138_s14  ;;  %211 = vrot.lane.b32.xlu0 %v203_v8, %s2135_s2  ;;  %v2415_v8 = vld [vmem:[%s2792_s4 + $0x20] sm:$0xff] }
 0x175   :  { %v2054_v33 = vpack.c.bf16 %v2420_v9, %v2415_v8 }
 0x1d2   :  { %v206_v41 = vpop.permute.xlu1 %205  ;;  %v187_v42 = vpop.permute.xlu0 %186 }
 0x1d3   :  { %v218_v43 = vsel %vm217_vm10, %v2290_v51, %v187_v42  ;;  %v2060_v42 = vpack.c.bf16 %v2448_v29, %v2443_v28  ;;  %v1505_v28 = vld [vmem:[%s2792_s4 + $0x70] sm:$0xff]  ;;  %v1506_v29 = vld [vmem:[%s2792_s4 + $0x78] sm:$0xff] }
 0x1d4   :  { %v223_v46 = vsel %vm222_vm11, %v218_v43, %v206_v41  ;;  %v2057_v41 = vpack.c.bf16 %v2438_v27, %v2428_v14  ;;  %v1502_v14 = vld [vmem:[%s2792_s4 + $0x58] sm:$0xff] }
 0x1d5   :  { %v231_v47 = vcombine.high %v223_v46, %v223_v46  ;;  %v238_v48 = vrot.slane %v223_v46, %v2376_v40 }
 0x1d6   :  { %v208_v50 = vpop.permute.xlu1 %207  ;;  %v189_v52 = vpop.permute.xlu0 %188 }
 0x1d7   :  { %v219_v15 = vsel %vm217_vm10, %v2288_v49, %v189_v52  ;;  %v245_v53 = vrot.slane %v231_v47, %v2376_v40  ;;  %v246_v54 = vcombine.high %v238_v48, %v238_v48 }
 0x1d8   :  { %v224_v56 = vsel %vm222_vm11, %v219_v15, %v208_v50 }
 0x1d9   :  { %v247_v57 = vcombine.high %v245_v53, %v245_v53  ;;  %v316_v51 = vcombine.low %v238_v48, %v246_v54  ;;  %v255_v58 = vrot.slane %v224_v56, %v2376_v40  ;;  %v248_v61 = vcombine.high %v224_v56, %v224_v56 }
 0x1da   :  { %v210_v59 = vpop.permute.xlu1 %209  ;;  %v191_v60 = vpop.permute.xlu0 %190 }
 0x1db   :  { %v220_v49 = vsel %vm217_vm10, %v2320_v7, %v191_v60  ;;  %v317_v63 = vcombine.low %v245_v53, %v247_v57  ;;  %v263_v7 = vcombine.high %v255_v58, %v255_v58  ;;  %v324_v10 = vrot.slane %v316_v51, %v2376_v40 }
 0x1dc   :  { %v225_v5 = vsel %vm222_vm11, %v220_v49, %v210_v59  ;;  %v262_v20 = vrot.slane %v248_v61, %v2376_v40 }
 0x1dd   :  { %v331_v11 = vrot.slane %v317_v63, %v2376_v40  ;;  %v264_v12 = vcombine.high %v225_v5, %v225_v5  ;;  %v271_v13 = vrot.slane %v225_v5, %v2376_v40  ;;  %v333_v22 = vcombine.low %v255_v58, %v263_v7 }
 0x1de   :  { %v193_v17 = vpop.permute.xlu1 %192  ;;  %v633_v18 = vpop.permute.xlu0 %632 }
 0x1df   :  { %v2451_v30 = vsel %vm375_vm12, %v223_v46, %v633_v18  ;;  %v332_v31 = vcombine.low %v324_v10, %v331_v11  ;;  %v2454_v32 = vrot.slane %v264_v12, %v2376_v40  ;;  %v279_v36 = vcombine.high %v271_v13, %v271_v13 }
 0x1e0   :  { %v652_v34 = vcombine.high %v2451_v30, %v2451_v30  ;;  %v659_v35 = vrot.slane %v2451_v30, %v2409_v4  ;;  %v334_v37 = vcombine.low %v262_v20, %v271_v13  ;;  %v221_v38 = vsel %vm217_vm10, %v2312_v1, %v193_v17 }
 0x1e1   :  { %1908 = vmatprep.mubr.msk.f32.mxu1 %vm375_vm12, %v332_v31  ;;  %v341_v39 = vrot.slane %v333_v22, %v2376_v40  ;;  %v280_v48 = vcombine.high %v2454_v32, %v2454_v32  ;;  %v2477_v50 = vcombine.low %v279_v36, %v2454_v32 }
 0x1e2   :  { %v666_v43 = vrot.slane %v652_v34, %v2409_v4  ;;  %v667_v44 = vcombine.high %v659_v35, %v659_v35  ;;  %v2472_v45 = vrot.slane %v659_v35, %v2409_v4  ;;  %v637_v46 = vpop.permute.xlu1 %636  ;;  %v635_v47 = vpop.permute.xlu0 %634  ;;  %v348_v53 = vrot.slane %v334_v37, %v2376_v40 }
 0x1e3   :  { %v2480_v52 = vsel %vm375_vm12, %v225_v5, %v637_v46  ;;  %v2483_v15 = vsel %vm375_vm12, %v224_v56, %v635_v47 }
 0x1e4   :  { %v668_v54 = vcombine.high %v666_v43, %v666_v43  ;;  %v2487_v55 = vrot.slane %v666_v43, %v2409_v4  ;;  %v2490_v57 = vrot.slane %v667_v44, %v2409_v4  ;;  %v740_v51 = vcombine.high %v2480_v52, %v2480_v52 }
 0x1e5   :  { %v747_v58 = vrot.slane %v2480_v52, %v2409_v4  ;;  %v1489_v59 = vcombine.high %v2480_v52, %v2338_v21  ;;  %v701_v56 = vcombine.high %v2483_v15, %v2483_v15  ;;  %v708_v60 = vrot.slane %v2483_v15, %v2409_v4 }
 0x1e6   :  { %v696_v61 = vrot.slane %v668_v54, %v2409_v4  ;;  %v851_v49 = vcombine.low %v2472_v45, %v2490_v57  ;;  %v1788_v63 = vcombine.high %v2472_v45, %v2490_v57  ;;  %v754_v5 = vrot.slane %v740_v51, %v2409_v4  ;;  %v212_v22 = vpop.permute.xlu0 %211  ;;  %v639_v54 = vpop.permute.xlu1 %638 }
 0x1e7   :  { %v755_v7 = vcombine.high %v747_v58, %v747_v58  ;;  %v763_v10 = vrot.slane %v747_v58, %v2409_v4  ;;  %v715_v11 = vrot.slane %v701_v56, %v2409_v4  ;;  %v716_v12 = vcombine.high %v708_v60, %v708_v60 }
 0x1e8   :  { %v853_v13 = vcombine.low %v2487_v55, %v696_v61  ;;  %v1789_v17 = vcombine.high %v2487_v55, %v696_v61  ;;  %v756_v18 = vcombine.high %v754_v5, %v754_v5  ;;  %v770_v20 = vrot.slane %v754_v5, %v2409_v4 }
 0x1e9   :  { %v777_v31 = vrot.slane %v755_v7, %v2409_v4  ;;  %v785_v32 = vcombine.high %v763_v10, %v763_v10  ;;  %v723_v34 = vrot.slane %v708_v60, %v2409_v4  ;;  %v730_v35 = vrot.slane %v715_v11, %v2409_v4 }
 0x1ea   :  { %v784_v36 = vrot.slane %v756_v18, %v2409_v4  ;;  %v786_v37 = vcombine.high %v770_v20, %v770_v20  ;;  %v737_v43 = vrot.slane %v716_v12, %v2409_v4  ;;  %v349_v44 = vcombine.low %v341_v39, %v348_v53 }
 0x1eb   :  { %v787_v45 = vcombine.high %v777_v31, %v777_v31  ;;  %v903_v46 = vcombine.low %v777_v31, %v785_v32  ;;  %v902_v47 = vcombine.low %v730_v35, %v763_v10  ;;  %v226_v55 = vsel %vm222_vm11, %v221_v38, %v212_v22 }
 0x1ec   :  { %v788_v57 = vcombine.high %v784_v36, %v784_v36  ;;  %v900_v51 = vcombine.low %v723_v34, %v737_v43  ;;  %v1790_v58 = vcombine.high %v723_v34, %v737_v43  ;;  %1909 = vmatmul.mubr.msk.f32.vlgmr.msra.gmra.mrb[0].mxu1 %vm375_vm12, %v349_v44  ;;  %v281_v56 = vcombine.high %v226_v55, %v226_v55 }
 0x1ed   :  { %v931_v60 = vrot.slane %v903_v46, %v2409_v4  ;;  %v949_v61 = vcombine.low %v787_v45, %v770_v20  ;;  %v924_v5 = vrot.slane %v902_v47, %v2409_v4  ;;  %2049 = vmatpush1.bf16.msra.mxu1 %v2048_v23  ;;  %v288_v39 = vrot.slane %v226_v55, %v2376_v40 }
 0x1ee   :  { %v910_v53 = vrot.slane %v900_v51, %v2409_v4  ;;  %v917_v38 = vrot.slane %v1790_v58, %v2409_v4  ;;  %v295_v7 = vrot.slane %v281_v56, %v2376_v40  ;;  %v647_v10 = vsel %vm375_vm12, %v226_v55, %v639_v54  ;;  %2050 = vmatprep.subr.bf16.mxu1 %v2137_v26 }
 0x1ef   :  { %v933_v11 = vcombine.low %v924_v5, %v931_v60  ;;  %v296_v12 = vcombine.high %v288_v39, %v288_v39  ;;  %v351_v18 = vcombine.low %v280_v48, %v288_v39  ;;  %v789_v20 = vcombine.high %v647_v10, %v647_v10 }
 0x1f0   :  { %v932_v22 = vcombine.low %v910_v53, %v917_v38  ;;  %v796_v62 = vrot.slane %v647_v10, %v2409_v4  ;;  %v2534_v0 = vcombine.low %v647_v10, %v1483_v6  ;;  %v358_v23 = vrot.slane %v2477_v50, %v2376_v40  ;;  %v1503_v53 = vld [vmem:[%s2792_s4 + $0x60] sm:$0xff]  ;;  %v1504_v38 = vld [vmem:[%s2792_s4 + $0x68] sm:$0xff] }
 0x1f1   :  { %v365_v31 = vrot.slane %v351_v18, %v2376_v40  ;;  %v367_v32 = vcombine.low %v296_v12, %v295_v7  ;;  %v803_v34 = vrot.slane %v789_v20, %v2409_v4  ;;  %2052 = vmatpush1.bf16.msra.mxu1 %v2051_v25  ;;  %v861_v48 = vrot.slane %v851_v49, %v2409_v4  ;;  %v1508_v12 = vld [vmem:[%s2792_s4 + $0x88] sm:$0xff]  ;;  %v1509_v20 = vld [vmem:[%s2792_s4 + $0x90] sm:$0xff] }
 0x1f2   :  { %v804_v35 = vcombine.high %v796_v62, %v796_v62  ;;  %v811_v43 = vrot.slane %v796_v62, %v2409_v4  ;;  %2053 = vmatprep.subr.bf16.mxu1 %v2137_v26  ;;  %v868_v1 = vrot.slane %v1788_v63, %v2409_v4  ;;  %v875_v6 = vrot.slane %v853_v13, %v2409_v4 }
 0x1f3   :  { %v366_v50 = vcombine.low %v358_v23, %v365_v31  ;;  %v374_v44 = vrot.slane %v367_v32, %v2376_v40  ;;  %v882_v45 = vrot.slane %v1789_v17, %v2409_v4  ;;  %v940_v46 = vrot.slane %v932_v22, %v2409_v4  ;;  %v1510_v22 = vld [vmem:[%s2792_s4 + $0x98] sm:$0xff]  ;;  %v1667_v23 = vld [vmem:[%s2796_s8 + $0x8] sm:$0xff] }
 0x1f4   :  { %v825_v2 = vrot.slane %v804_v35, %v2409_v4  ;;  %v826_v3 = vcombine.high %v811_v43, %v811_v43  ;;  %v883_v25 = vcombine.low %v861_v48, %v868_v1  ;;  %v947_v49 = vrot.slane %v933_v11, %v2409_v4  ;;  %v1507_v11 = vld [vmem:[%s2792_s4 + $0x80] sm:$0xff] }
 0x1f5   :  { %2055 = vmatpush1.bf16.msra.mxu1 %v2054_v33  ;;  %1911 = vmatprep.mubr.msk.f32.mxu1 %vm375_vm12, %v366_v50  ;;  %v884_v63 = vcombine.low %v875_v6, %v882_v45  ;;  %v950_v13 = vcombine.low %v784_v36, %v786_v37  ;;  %v951_v47 = vcombine.low %v788_v57, %v811_v43 }
 0x1f6   :  { %2056 = vmatprep.subr.bf16.mxu1 %v2137_v26  ;;  %1912 = vmatmul.mubr.msk.f32.gmra.mrb[2].mxu1 %vm375_vm12, %v374_v44  ;;  %v891_v17 = vrot.slane %v883_v25, %v2409_v4  ;;  %v948_v54 = vcombine.low %v940_v46, %v947_v49  ;;  %v952_v55 = vcombine.low %v825_v2, %v826_v3 }
 0x1f7   :  { %v898_v51 = vrot.slane %v884_v63, %v2409_v4  ;;  %1799 = vmatprep.mubr.msk.f32.mxu1 %vm217_vm10, %v2330_v16  ;;  %v959_v8 = vrot.slane %v949_v61, %v2409_v4  ;;  %v966_v9 = vrot.slane %v950_v13, %v2409_v4  ;;  %v973_v33 = vrot.slane %v951_v47, %v2409_v4 }
 0x1f8   :  { %v980_v36 = vrot.slane %v952_v55, %v2409_v4  ;;  %v818_v37 = vrot.slane %v803_v34, %v2409_v4  ;;  %v827_v57 = vcombine.high %v825_v2, %v825_v2  ;;  %v1795_v58 = vcombine.low %v2483_v15, %v2480_v52  ;;  %v1501_v15 = vld [vmem:[%s2792_s4 + $0x50] sm:$0xff] }
 0x1f9   :  { %2058 = vmatpush1.bf16.msra.mxu1 %v2057_v41  ;;  %v899_v56 = vcombine.low %v891_v17, %v898_v51  ;;  %v981_v16 = vcombine.low %v959_v8, %v966_v9  ;;  %v1798_v60 = vcombine.high %v2338_v21, %v2534_v0  ;;  %v1797_v61 = vcombine.low %v1489_v59, %v647_v10  ;;  %v1666_v0 = vld [vmem:[%s2796_s8] sm:$0xff] }
 0x1fa   :  { %2059 = vmatprep.subr.bf16.mxu1 %v2137_v26  ;;  %v982_v5 = vcombine.low %v973_v33, %v980_v36  ;;  %v998_v27 = vcombine.low %v827_v57, %v818_v37  ;;  %v2063_v52 = vpack.c.bf16 %v1502_v14, %v1501_v15  ;;  %v2066_v10 = vpack.c.bf16 %v1504_v38, %v1503_v53 }
 0x1fb   :  { %1946 = vmatprep.mubr.f32.mxu0 %v899_v56  ;;  %v989_v41 = vrot.slane %v981_v16, %v2409_v4  ;;  %v2072_v18 = vpack.c.bf16 %v1508_v12, %v1507_v11  ;;  %v2075_v62 = vpack.c.bf16 %v1510_v22, %v1509_v20  ;;  %v2078_v31 = vpack.c.bf16 %v1667_v23, %v1666_v0 }
 0x1fc   :  { %1947 = vmatmul.mubr.f32.vlgmr.msra.gmra.mrb[4].mxu0 %v948_v54  ;;  %v996_v39 = vrot.slane %v982_v5, %v2409_v4  ;;  %v1005_v21 = vrot.slane %v998_v27, %v2409_v4 }
 0x1fd   :  { %2061 = vmatpush1.bf16.msra.mxu1 %v2060_v42  ;;  %v2069_v42 = vpack.c.bf16 %v1506_v29, %v1505_v28  ;;  %2079 = vmatpush3.bf16.msra.mxu0 %v2078_v31 }
 0x1fe   :  { %2062 = vmatprep.subr.bf16.mxu1 %v2137_v26  ;;  %v997_v59 = vcombine.low %v989_v41, %v996_v39  ;;  %v1012_v7 = vrot.slane %v1005_v21, %v2409_v4  ;;  %2080 = vmatprep.subr.bf16.mxu0 %v2137_v26 }
 0x200   :  { %1949 = vmatprep.mubr.f32.mxu0 %v997_v59 }
 0x201   :  { %2064 = vmatpush1.bf16.msra.mxu1 %v2063_v52  ;;  %1950 = vmatmul.mubr.f32.gmra.mrb[6].mxu0 %v1012_v7 }
 0x202   :  { %2065 = vmatprep.subr.bf16.mxu1 %v2137_v26  ;;  %1976 = vmatprep.mubr.msk.f32.mxu0 %vm2141_vm1, %v2134_v19 }
 0x205   :  { %2067 = vmatpush1.bf16.msra.mxu1 %v2066_v10 }
 0x206   :  { %2068 = vmatprep.subr.bf16.mxu1 %v2137_v26 }
 0x209   :  { %2070 = vmatpush1.bf16.msra.mxu1 %v2069_v42 }
 0x20a   :  { %2071 = vmatprep.subr.bf16.mxu1 %v2137_v26 }
 0x20d   :  { %2073 = vmatpush1.bf16.msra.mxu1 %v2072_v18 }
 0x20e   :  { %2074 = vmatprep.subr.bf16.mxu1 %v2137_v26 }
 0x211   :  { %2076 = vmatpush1.bf16.msra.mxu1 %v2075_v62 }
 0x214   :  { %1598 = vmatmul.mubr.f32.vlgmr.msra.gmra.mrb[4].mxu1 %v2451_v30 }
 0x215   :  { %1800 = vmatprep.mubr.msk.f32.mxu1 %vm217_vm10, %v2349_v24  ;;  %v1782_v24 = vld [vmem:[%s2793_s5] ss:$0 sm:$0xff] }
 0x218   :  { %1603 = vmatmul.mubr.f32.gmra.mrb[6].mxu1 %v1795_v58  ;;  %v2646_v58 = vld [vmem:[%s2794_s6] ss:$0 sm:$0xff] }
 0x219   :  { %1801 = vmatprep.mubr.msk.f32.mxu1 %vm217_vm10, %v1798_v60 }
 0x21c   :  { %1608 = vmatmul.mubr.f32.gmra.mrb[8].mxu1 %v1797_v61 }
 0x2bf   :  { %v1910_v30 = vpop.f32.mrb[0].mxu1 }
 0x2c0   :  { %v456_v32 = vadd.f32 %v1910_v30, %v1782_v24  ;;  %v450_v34 = vpop.f32.mrb[1].mxu1 }
 0x2c1   :  { %v451_v48 = vadd.f32 %v1782_v24, %v450_v34 }
 0x2c2   :  { %v470_v35 = vmax.f32 %v456_v32, 0.0 }
 0x2c3   :  { %v469_v43 = vmax.f32 %v451_v48, 0.0 }
 0x2c4   :  { %v494_v1 = vcombine.high %v470_v35, %v470_v35  ;;  %v501_v6 = vrot.slane %v470_v35, %v2376_v40 }
 0x2c5   :  { %v477_v50 = vcombine.high %v469_v43, %v469_v43  ;;  %v484_v44 = vrot.slane %v469_v43, %v2376_v40 }
 0x2c6   :  { %v508_v45 = vrot.slane %v494_v1, %v2376_v40  ;;  %v509_v46 = vcombine.high %v501_v6, %v501_v6 }
 0x2c7   :  { %v491_v2 = vrot.slane %v477_v50, %v2376_v40  ;;  %v492_v3 = vcombine.high %v484_v44, %v484_v44 }
 0x2c8   :  { %v553_v25 = vcombine.low %v501_v6, %v509_v46  ;;  %v567_v17 = vrot.slane %v508_v45, %v2376_v40  ;;  %v510_v60 = vcombine.high %v508_v45, %v508_v45 }
 0x2c9   :  { %v493_v49 = vcombine.high %v491_v2, %v491_v2  ;;  %v536_v63 = vcombine.low %v484_v44, %v492_v3  ;;  %v1913_v13 = vpop.f32.mrb[2].mxu1 }
 0x2ca   :  { %v560_v47 = vrot.slane %v553_v25, %v2376_v40  ;;  %v466_v54 = vadd.f32 %v1913_v13, %v1782_v24  ;;  %v460_v55 = vpop.f32.mrb[3].mxu1 }
 0x2cb   :  { %v537_v51 = vcombine.low %v491_v2, %v493_v49  ;;  %v461_v8 = vadd.f32 %v1782_v24, %v460_v55  ;;  %v544_v36 = vrot.slane %v536_v63, %v2376_v40 }
 0x2cc   :  { %v568_v9 = vcombine.low %v560_v47, %v567_v17  ;;  %v472_v33 = vmax.f32 %v466_v54, 0.0 }
 0x2cd   :  { %v551_v37 = vrot.slane %v537_v51, %v2376_v40  ;;  %v471_v57 = vmax.f32 %v461_v8, 0.0 }
 0x2ce   :  { %v534_v56 = vrot.slane %v472_v33, %v2376_v40  ;;  %v608_v14 = vsel %vm607_vm13, %v568_v9, -inf }
 0x2cf   :  { %v552_v16 = vcombine.low %v544_v36, %v551_v37  ;;  %v511_v61 = vcombine.high %v471_v57, %v471_v57  ;;  %v518_v5 = vrot.slane %v471_v57, %v2376_v40  ;;  %v1948_v15 = vpop.f32.mrb[4].mxu0 }
 0x2d0   :  { %v1089_v27 = vadd.f32 %v1948_v15, %v2646_v58  ;;  %v1083_v41 = vpop.f32.mrb[5].mxu0  ;;  %v535_v38 = vcombine.high %v534_v56, %v534_v56 }
 0x2d1   :  { %v606_v39 = vsel %vm217_vm10, %v552_v16, -inf  ;;  %v525_v21 = vrot.slane %v511_v61, %v2376_v40  ;;  %v526_v52 = vcombine.high %v518_v5, %v518_v5  ;;  %v569_v59 = vcombine.low %v510_v60, %v518_v5 }
 0x2d2   :  { %v2654_v53 = vmax.f32 %v606_v39, %v608_v14  ;;  %v1103_v7 = vmax.f32 %v1089_v27, 0.0  ;;  %v1084_v10 = vadd.f32 %v2646_v58, %v1083_v41  ;;  %v600_v31 = vrot.slane %v535_v38, %v2376_v40 }
 0x2d3   :  { %v527_v28 = vcombine.high %v525_v21, %v525_v21  ;;  %v570_v29 = vcombine.low %v526_v52, %v525_v21  ;;  %v577_v20 = vrot.slane %v569_v59, %v2376_v40 }
 0x2d4   :  { %v1159_v42 = vcombine.high %v1103_v7, %v1103_v7  ;;  %v1166_v11 = vrot.slane %v1103_v7, %v2409_v4  ;;  %v1102_v12 = vmax.f32 %v1084_v10, 0.0  ;;  %v1951_v18 = vpop.f32.mrb[6].mxu0  ;;  %v610_v57 = vrot.slane %v2654_v53, 4 }
 0x2d5   :  { %v584_v22 = vrot.slane %v570_v29, %v2376_v40  ;;  %v586_v62 = vcombine.low %v527_v28, %v534_v56  ;;  %v1099_v0 = vadd.f32 %v1951_v18, %v2646_v58  ;;  %v1093_v23 = vpop.f32.mrb[7].mxu0 }
 0x2d6   :  { %v1173_v24 = vrot.slane %v1159_v42, %v2409_v4  ;;  %v1174_v30 = vcombine.high %v1166_v11, %v1166_v11  ;;  %v1110_v32 = vcombine.high %v1102_v12, %v1102_v12  ;;  %v1182_v35 = vrot.slane %v1166_v11, %v2409_v4 }
 0x2d7   :  { %v585_v34 = vcombine.low %v577_v20, %v584_v22  ;;  %v593_v48 = vrot.slane %v586_v62, %v2376_v40  ;;  %v1117_v43 = vrot.slane %v1102_v12, %v2409_v4  ;;  %v1105_v2 = vmax.f32 %v1099_v0, 0.0 }
 0x2d8   :  { %v1175_v1 = vcombine.high %v1173_v24, %v1173_v24  ;;  %v1189_v6 = vrot.slane %v1173_v24, %v2409_v4  ;;  %v1196_v50 = vrot.slane %v1174_v30, %v2409_v4  ;;  %v1124_v44 = vrot.slane %v1110_v32, %v2409_v4  ;;  %v1794_v32 = vld [vmem:[%s2795_s7] ss:$0 sm:$0xff] }
 0x2d9   :  { %v601_v45 = vcombine.low %v593_v48, %v600_v31  ;;  %v1125_v46 = vcombine.high %v1117_v43, %v1117_v43  ;;  %v616_v40 = vsel %vm217_vm10, %v585_v34, -inf  ;;  %v1133_v17 = vrot.slane %v1117_v43, %v2409_v4 }
 0x2da   :  { %v1203_v3 = vrot.slane %v1175_v1, %v2409_v4  ;;  %v1205_v25 = vcombine.high %v1189_v6, %v1189_v6  ;;  %v1328_v49 = vcombine.low %v1182_v35, %v1196_v50  ;;  %v1793_v63 = vcombine.high %v1182_v35, %v1196_v50 }
 0x2db   :  { %v617_v13 = vsel %vm607_vm13, %v601_v45, -inf  ;;  %v1126_v47 = vcombine.high %v1124_v44, %v1124_v44  ;;  %v1350_v8 = vrot.slane %v1189_v6, %v2409_v4  ;;  %v1140_v9 = vrot.slane %v1124_v44, %v2409_v4 }
 0x2dc   :  { %v2673_v54 = vmax.f32 %v616_v40, %v617_v13  ;;  %v1336_v55 = vrot.slane %v1328_v49, %v2409_v4  ;;  %v1343_v51 = vrot.slane %v1793_v63, %v2409_v4  ;;  %v1147_v33 = vrot.slane %v1125_v46, %v2409_v4 }
 0x2dd   :  { %v1154_v36 = vrot.slane %v1126_v47, %v2409_v4  ;;  %v2682_v37 = vrot.slane %v1105_v2, %v2409_v4  ;;  %v1367_v16 = vcombine.low %v1203_v3, %v1205_v25  ;;  %v1094_v60 = vadd.f32 %v2646_v58, %v1093_v23 }
 0x2de   :  { %v1351_v56 = vcombine.low %v1336_v55, %v1343_v51  ;;  %v1279_v61 = vcombine.low %v1133_v17, %v1147_v33  ;;  %v1791_v5 = vcombine.high %v1133_v17, %v1147_v33  ;;  %v1365_v41 = vrot.slane %v1350_v8, %v2409_v4 }
 0x2df   :  { %v1281_v15 = vcombine.low %v1140_v9, %v1154_v36  ;;  %v1792_v14 = vcombine.high %v1140_v9, %v1154_v36  ;;  %v1264_v39 = vcombine.high %v2682_v37, %v2682_v37  ;;  %v1104_v21 = vmax.f32 %v1094_v60, 0.0 }
 0x2e0   :  { %v1358_v27 = vrot.slane %v1351_v56, %v2409_v4  ;;  %v1289_v52 = vrot.slane %v1279_v61, %v2409_v4  ;;  %v1296_v59 = vrot.slane %v1791_v5, %v2409_v4  ;;  %v619_v7 = vrot.slane %v2673_v54, 4 }
 0x2e1   :  { %v1303_v38 = vrot.slane %v1281_v15, %v2409_v4  ;;  %v1310_v58 = vrot.slane %v1792_v14, %v2409_v4  ;;  %v1278_v10 = vrot.slane %v1264_v39, %v2409_v4  ;;  %v1208_v28 = vcombine.high %v1104_v21, %v1104_v21 }
 0x2e2   :  { %v1215_v29 = vrot.slane %v1104_v21, %v2409_v4  ;;  %v1311_v42 = vcombine.low %v1289_v52, %v1296_v59  ;;  %v1207_v12 = vcombine.high %v1203_v3, %v1203_v3  ;;  %v611_v18 = vmax.f32 %v2654_v53, %v610_v57 }
 0x2e3   :  { %v1312_v11 = vcombine.low %v1303_v38, %v1310_v58  ;;  %v1271_v20 = vrot.slane %v2682_v37, %v2409_v4  ;;  %v1222_v22 = vrot.slane %v1208_v28, %v2409_v4  ;;  %v1366_v23 = vcombine.low %v1358_v27, %v1365_v41 }
 0x2e4   :  { %v1223_v62 = vcombine.high %v1215_v29, %v1215_v29  ;;  %v1231_v0 = vrot.slane %v1215_v29, %v2409_v4  ;;  %v1319_v31 = vrot.slane %v1311_v42, %v2409_v4  ;;  %v1377_v30 = vrot.slane %v1367_v16, %v2409_v4 }
 0x2e5   :  { %v1326_v24 = vrot.slane %v1312_v11, %v2409_v4  ;;  %v1438_v53 = vrot.slane %v1278_v10, %v2409_v4  ;;  %v1224_v34 = vcombine.high %v1222_v22, %v1222_v22  ;;  %v1238_v48 = vrot.slane %v1222_v22, %v2409_v4 }
 0x2e6   :  { %v1245_v35 = vrot.slane %v1223_v62, %v2409_v4  ;;  %v1253_v1 = vcombine.high %v1231_v0, %v1231_v0  ;;  %v1368_v6 = vcombine.low %v1207_v12, %v1231_v0  ;;  %v612_v44 = vrot.slane %v611_v18, 2 }
 0x2e7   :  { %v1327_v43 = vcombine.low %v1319_v31, %v1326_v24  ;;  %v1599_v50 = vpop.f32.mrb[4].mxu1  ;;  %v1252_v45 = vrot.slane %v1224_v34, %v2409_v4  ;;  %v1254_v46 = vcombine.high %v1238_v48, %v1238_v48  ;;  %v1461_v13 = vsel %vm1460_vm14, %v1366_v23, -inf }
 0x2e8   :  { %v1255_v2 = vcombine.high %v1245_v35, %v1245_v35  ;;  %v1600_v3 = vadd.f32 %v1794_v32, %v1599_v50  ;;  %v1601_v25 = vpop.f32.mrb[5].mxu1  ;;  %v1369_v49 = vcombine.low %v1245_v35, %v1253_v1  ;;  %v1384_v63 = vrot.slane %v1368_v6, %v2409_v4 }
 0x2e9   :  { %v1459_v40 = vsel %vm217_vm10, %v1327_v43, -inf  ;;  %v1256_v47 = vcombine.high %v1252_v45, %v1252_v45  ;;  %v1416_v55 = vcombine.low %v1252_v45, %v1254_v46  ;;  %v613_v36 = vmax.f32 %v611_v18, %v612_v44 }
 0x2ea   :  { %v1370_v17 = vcombine.low %v1255_v2, %v1238_v48  ;;  %v1613_v51 = vmax.f32 %v1600_v3, 0.0  ;;  %v1399_v8 = vcombine.low %v1377_v30, %v1384_v63  ;;  %v1462_v33 = vmax.f32 %v1459_v40, %v1461_v13  ;;  %v1669_v63 = vld [vmem:[%s2796_s8 + $0x18] sm:$0xff]  ;;  %v1670_v40 = vld [vmem:[%s2796_s8 + $0x20] sm:$0xff] }
 0x2eb   :  { %v1604_v9 = vpop.f32.mrb[6].mxu1  ;;  %v1391_v37 = vrot.slane %v1369_v49, %v2409_v4  ;;  %v1417_v56 = vcombine.low %v1256_v47, %v1271_v20  ;;  %v1453_v61 = vrot.slane %v1438_v53, %v2409_v4  ;;  %v620_v14 = vmax.f32 %v2673_v54, %v619_v7  ;;  %v1668_v49 = vld [vmem:[%s2796_s8 + $0x10] sm:$0xff] }
 0x2ec   :  { %v1398_v57 = vrot.slane %v1370_v17, %v2409_v4  ;;  %v1619_v16 = vcombine.high %v1613_v51, %v1613_v51  ;;  %v1606_v60 = vpop.f32.mrb[7].mxu1  ;;  %v1605_v5 = vadd.f32 %v1794_v32, %v1604_v9  ;;  %v1463_v15 = vrot.slane %v1462_v33, 4  ;;  %v1671_v17 = vld [vmem:[%s2796_s8 + $0x28] sm:$0xff] }
 0x2ed   :  { %v1424_v41 = vrot.slane %v1416_v55, %v2409_v4  ;;  %v1431_v39 = vrot.slane %v1417_v56, %v2409_v4  ;;  %v1407_v52 = vrot.slane %v1399_v8, %v2409_v4  ;;  %v614_v58 = vrot.slane %v613_v36, 1 }
 0x2ee   :  { %v1400_v27 = vcombine.low %v1391_v37, %v1398_v57  ;;  %v1623_v21 = vcombine.low %v1613_v51, %v1619_v16  ;;  %v1614_v59 = vmax.f32 %v1605_v5, 0.0  ;;  %v621_v10 = vrot.slane %v620_v14, 2  ;;  %v1672_v37 = vld [vmem:[%s2796_s8 + $0x30] sm:$0xff]  ;;  %v1673_v57 = vld [vmem:[%s2796_s8 + $0x38] sm:$0xff] }
 0x2ef   :  { %v1609_v38 = vpop.f32.mrb[8].mxu1  ;;  %v1439_v29 = vcombine.low %v1424_v41, %v1431_v39  ;;  %v1464_v18 = vmax.f32 %v1462_v33, %v1463_v15  ;;  %v615_v35 = vmax.f32 %v613_v36, %v614_v58  ;;  %v2081_v47 = vpack.c.bf16 %v1669_v63, %v1668_v49 }
 0x2f0   :  { %v1414_v28 = vrot.slane %v1400_v27, %v2409_v4  ;;  %v1627_v42 = vsel %vm217_vm10, %v1623_v21, -inf  ;;  %v1610_v11 = vadd.f32 %v1794_v32, %v1609_v38  ;;  %v1611_v12 = vpop.f32.mrb[9].mxu1  ;;  %v1620_v54 = vcombine.high %v1614_v59, %v1614_v59  ;;  %v1675_v27 = vld [vmem:[%s2796_s8 + $0x48] sm:$0xff] }
 0x2f1   :  { %v1629_v7 = vsel %vm1628_vm15, %v1614_v59, -inf  ;;  %v622_v20 = vmax.f32 %v620_v14, %v621_v10  ;;  %v1446_v62 = vrot.slane %v1439_v29, %v2409_v4  ;;  %v1465_v48 = vrot.slane %v1464_v18, 2  ;;  %2082 = vmatpush3.bf16.msra.mxu0 %v2081_v47  ;;  %v1674_v14 = vld [vmem:[%s2796_s8 + $0x40] sm:$0xff]  ;;  %v1676_v10 = vld [vmem:[%s2796_s8 + $0x50] sm:$0xff] }
 0x2f2   :  { %v1415_v22 = vcombine.low %v1407_v52, %v1414_v28  ;;  %v1630_v0 = vmax.f32 %v1627_v42, %v1629_v7  ;;  %v1615_v23 = vmax.f32 %v1610_v11, 0.0  ;;  %v2084_v9 = vpack.c.bf16 %v1671_v17, %v1670_v40  ;;  %2083 = vmatprep.subr.bf16.mxu0 %v2137_v26  ;;  %v1677_v28 = vld [vmem:[%s2796_s8 + $0x58] sm:$0xff] }
 0x2f3   :  { %v623_v31 = vrot.slane %v622_v20, 1  ;;  %v1454_v34 = vcombine.low %v1446_v62, %v1453_v61  ;;  %v1466_v13 = vmax.f32 %v1464_v18, %v1465_v48  ;;  %v2087_v5 = vpack.c.bf16 %v1673_v57, %v1672_v37  ;;  %v1802_v18 = vld [vmem:[%s2797_s9] ss:$0 sm:$0xff] }
 0x2f4   :  { %v1631_v24 = vrot.slane %v1630_v0, 4  ;;  %v1621_v30 = vcombine.high %v1615_v23, %v1615_v23  ;;  %v1624_v53 = vcombine.low %v1620_v54, %v1615_v23  ;;  %v1469_v32 = vsel %vm217_vm10, %v1415_v22, -inf }
 0x2f5   :  { %v624_v43 = vmax.f32 %v622_v20, %v623_v31  ;;  %v1470_v4 = vsel %vm1460_vm14, %v1454_v34, -inf  ;;  %v1467_v56 = vrot.slane %v1466_v13, 1  ;;  %2085 = vmatpush3.bf16.msra.mxu0 %v2084_v9  ;;  %v2090_v59 = vpack.c.bf16 %v1675_v27, %v1674_v14 }
 0x2f6   :  { %v1632_v1 = vmax.f32 %v1630_v0, %v1631_v24  ;;  %v1637_v6 = vsel %vm217_vm10, %v1624_v53, -inf  ;;  %v1638_v50 = vsel %vm1628_vm15, %v1621_v30, -inf  ;;  %v1471_v45 = vmax.f32 %v1469_v32, %v1470_v4  ;;  %2086 = vmatprep.subr.bf16.mxu0 %v2137_v26 }
 0x2f7   :  { %v1639_v44 = vmax.f32 %v1637_v6, %v1638_v50  ;;  %v1649_v46 = vsel %vm1648_vm0, %v624_v43, %v615_v35  ;;  %v1468_v41 = vmax.f32 %v1466_v13, %v1467_v56  ;;  %v2093_v29 = vpack.c.bf16 %v1677_v28, %v1676_v10 }
 0x2f8   :  { %v1633_v2 = vrot.slane %v1632_v1, 2  ;;  %v1472_v25 = vrot.slane %v1471_v45, 4 }
 0x2f9   :  { %v1640_v3 = vrot.slane %v1639_v44, 4  ;;  %2088 = vmatpush3.bf16.msra.mxu0 %v2087_v5 }
 0x2fa   :  { %v1634_v55 = vmax.f32 %v1632_v1, %v1633_v2  ;;  %v1473_v8 = vmax.f32 %v1471_v45, %v1472_v25  ;;  %2089 = vmatprep.subr.bf16.mxu0 %v2137_v26 }
 0x2fb   :  { %v1641_v51 = vmax.f32 %v1639_v44, %v1640_v3 }
 0x2fc   :  { %v1474_v36 = vrot.slane %v1473_v8, 2  ;;  %v1635_v60 = vrot.slane %v1634_v55, 1 }
 0x2fd   :  { %v1642_v33 = vrot.slane %v1641_v51, 2  ;;  %2091 = vmatpush3.bf16.msra.mxu0 %v2090_v59 }
 0x2fe   :  { %v1475_v16 = vmax.f32 %v1473_v8, %v1474_v36  ;;  %v1636_v21 = vmax.f32 %v1634_v55, %v1635_v60  ;;  %2092 = vmatprep.subr.bf16.mxu0 %v2137_v26 }
 0x2ff   :  { %v1643_v61 = vmax.f32 %v1641_v51, %v1642_v33 }
 0x300   :  { %v1476_v15 = vrot.slane %v1475_v16, 1 }
 0x301   :  { %v1644_v19 = vrot.slane %v1643_v61, 1  ;;  %2094 = vmatpush3.bf16.msra.mxu0 %v2093_v29 }
 0x302   :  { %v1477_v39 = vmax.f32 %v1475_v16, %v1476_v15 }
 0x303   :  { %v1645_v52 = vmax.f32 %v1643_v61, %v1644_v19 }
 0x304   :  { %v1653_v38 = vsel %vm1648_vm0, %v1477_v39, %v1468_v41 }
 0x305   :  { %v1659_v58 = vsel %vm1648_vm0, %v1645_v52, %v1636_v21  ;;  %1654 = vrot.lane.b32.xlu0 %v1653_v38, %s2136_s11 }
 0x306   :  { %1660 = vrot.lane.b32.xlu1 %v1659_v58, %s2135_s2  ;;  %s2142_s2 = smov [#allocation2]  }
 0x307   :  { %s1765_s11 = sshll.u32 %s2142_s2, 4  ;;  %s1766_s11 = int_to_ptr.vmem [resolvable:$true] %s1765_s11 }
 0x308   :  { %s2109_s3 = scalar_lea.vmem %s1766_s11, 32  ;;  %p2114_p1 = scmp.lt.s32.totalorder %s1766_s11, %s1766_s11 }
 0x309   :  { %p2110_p0 = scmp.ne.s32.totalorder %s1766_s11, %s2109_s3  ;;  %p2115_p2 = scmp.lt.s32.totalorder %s2109_s3, %s2109_s3 }
 0x30b   :  { %p2116_p3 = por %p2115_p2, %p2114_p1 }
 0x30d   :  { %p2117_p4 = pnand %p2116_p3, %p2110_p0 }
 0x377   :  { %v1655_v42 = vpop.permute.xlu0 %1654 }
 0x378   :  { %v1661_v11 = vpop.permute.xlu1 %1660  ;;  %v1663_v12 = vsel %vm217_vm10, %v1649_v46, %v1655_v42 }
 0x379   :  { %v1664_v54 = vsel %vm222_vm11, %v1663_v12, %v1661_v11 }
 0x37a   :  { %2107 = vtanh.f32 %v1664_v54 }
 0x384   :  { %v2108_v7 = vpop.eup %2107 }
 0x385   :  { %1977 = vmatmul.mubr.msk.f32.vlgmr.msra.gmra.mrb[8].mxu0 %vm375_vm12, %v2108_v7 }
 0x458   :  { %v1754_v20 = vpop.f32.mrb[8].mxu0 }
 0x459   :  { %v1755_v22 = vadd.f32 %v1802_v18, %v1754_v20  ;;  %v1978_v26 = vpop.f32.mrb[9].mxu0 }
 0x45b   :  { %1758 = vst [vmem:[#allocation2] sm:$0x3] %v1755_v22 }
 0x45c   :  { %2120 = shalt.err (!%p2117_p4)
}
 0x45d   :  { %s2121_s6 = scalar_lea.hbm %s2798_s10, 32 }
 0x45e   :  { %p2122_p5 = scmp.ne.s32.totalorder %s2798_s10, %s2121_s6  ;;  %p2125_p6 = scmp.lt.u32.totalorder %s2121_s6, %s2798_s10 }
 0x460   :  { %p2127_p7 = pnand %p2125_p6, %p2122_p5 }
 0x462   :  { %2130 = shalt.err (!%p2127_p7)
}
 0x463   :  { %1768 = dma.vmem_to_hbm [thread:$0]  %s1766_s11, 32, %s2798_s10, [#allocation3]  }
 0x464   :  { %2131 = dma.done.wait [#allocation3], 32  }
 0x465   :  { %2132 = vsyncadd [#allocation3], 4294967264 }
 0x466   :  { %1772 = vsyncpa [#allocation3], 1 }

</bundles_post_ra>
